<compile_context>
chip_gen: v7x
topology: tpu7x:2x2x1
jax: 0.10.0
libtpu: 0.0.40
codegen_flags: <defaults>
</compile_context>

<pallas_src>
import jax
import jax.numpy as jnp
from jax.experimental import pallas as pl
from jax.experimental.pallas import tpu as pltpu


def _conv1x1_nchw_kernel(y_ref, w_ref, b_ref, o_ref):
    # y_ref: (1, K, TS)  activations (compute dtype, e.g. bf16)
    # w_ref: (C_out, K)  weight     (compute dtype)
    # b_ref: (C_out, 1)  bias       (float32)
    # o_ref: (1, C_out, TS)
    acc = jnp.dot(w_ref[...], y_ref[0], preferred_element_type=jnp.float32)
    o_ref[0] = (acc + b_ref[...]).astype(o_ref.dtype)


def _pick_spatial_tile(S, K, C_out, in_itemsize, out_itemsize,
                       max_tile=2048, vmem_budget=24 * 1024 * 1024):
    """Largest lane-dense spatial tile that keeps the double-buffered streaming
    tiles inside a conservative VMEM budget (fits v7x's 64 MiB VMEM)."""
    per_col = 2 * (K * in_itemsize + C_out * out_itemsize)  # dbl-buffered bytes / column
    budget_tile = max(128, (vmem_budget // max(per_col, 1)) // 128 * 128)
    cap = min(max_tile, budget_tile)
    if S <= cap:
        return S  # full-extent block is always a legal block shape
    return cap    # multiple of 128


def downsample2d(x, weight, bias, *, compute_dtype=jnp.bfloat16):
    """
    x:      (B, C, H, W)        NCHW, H and W even
    weight: (C_out, 4*C, 1, 1)  Conv2d weight
    bias:   (C_out,)
    returns (B, C_out, H//2, W//2)  NCHW
    """
    B, C, H, W = x.shape
    assert H % 2 == 0 and W % 2 == 0, "H and W must be even"
    C_out = weight.shape[0]
    K = 4 * C
    H2, W2 = H // 2, W // 2
    S = H2 * W2

    # Cast up front so the unshuffle copy and the kernel stream run at the
    # (narrower) compute dtype.
    xc = x.astype(compute_dtype)

    # Pixel-unshuffle: 'b c (h p1) (w p2) -> b (c p1 p2) (h w)'  (single XLA copy).
    y = xc.reshape(B, C, H2, 2, W2, 2)
    y = jnp.transpose(y, (0, 1, 3, 5, 2, 4))     # b c p1 p2 h w
    y = y.reshape(B, K, S)                       # (B, 4C, H2*W2), channel = c*4 + p1*2 + p2

    w_mat = weight.reshape(C_out, K).astype(compute_dtype)    # (C_out, 4C)
    bias2d = bias.astype(jnp.float32).reshape(C_out, 1)       # f32 bias

    in_itemsize = jnp.dtype(compute_dtype).itemsize
    out_itemsize = jnp.dtype(x.dtype).itemsize
    ts = _pick_spatial_tile(S, K, C_out, in_itemsize, out_itemsize)
    n_s = pl.cdiv(S, ts)

    out = pl.pallas_call(
        _conv1x1_nchw_kernel,
        out_shape=jax.ShapeDtypeStruct((B, C_out, S), x.dtype),
        grid_spec=pltpu.PrefetchScalarGridSpec(
            num_scalar_prefetch=0,
            grid=(B, n_s),
            in_specs=[
                pl.BlockSpec((1, K, ts), lambda b, s: (b, 0, s)),    # streamed activations
                pl.BlockSpec((C_out, K), lambda b, s: (0, 0)),       # resident weight
                pl.BlockSpec((C_out, 1), lambda b, s: (0, 0)),       # resident bias
            ],
            out_specs=pl.BlockSpec((1, C_out, ts), lambda b, s: (b, 0, s)),
        ),
        compiler_params=pltpu.CompilerParams(
            dimension_semantics=("parallel", "parallel"),
            vmem_limit_bytes=64 * 1024 * 1024,
        ),
    )(y, w_mat, bias2d)

    return out.reshape(B, C_out, H2, W2)


if __name__ == "__main__":
    key = jax.random.PRNGKey(0)
    kx, kw, kb = jax.random.split(key, 3)

    B, C_in, H, W = 2, 4, 16, 16
    C_out = 8

    x = jax.random.normal(kx, (B, C_in, H, W), dtype=jnp.float32)

    # Deterministic parameter init (Conv2d(dim_in*4, dim_out, 1) shapes).
    fan_in = 4 * C_in
    bound = 1.0 / (fan_in ** 0.5)
    weight = jax.random.uniform(kw, (C_out, 4 * C_in, 1, 1),
                                minval=-bound, maxval=bound, dtype=jnp.float32)
    bias = jax.random.uniform(kb, (C_out,),
                              minval=-bound, maxval=bound, dtype=jnp.float32)

    # Pure-JAX f32 reference of the module semantics.
    yref = x.reshape(B, C_in, H // 2, 2, W // 2, 2)
    yref = jnp.transpose(yref, (0, 1, 3, 5, 2, 4)).reshape(B, 4 * C_in, H // 2, W // 2)
    ref = jnp.einsum('bkhw,ok->bohw', yref, weight.reshape(C_out, 4 * C_in)) \
          + bias[None, :, None, None]

    # f32 compute path: tight tolerance.
    out_f32 = jax.block_until_ready(downsample2d(x, weight, bias,
                                                 compute_dtype=jnp.float32))
    assert out_f32.shape == (B, C_out, H // 2, W // 2)
    assert jnp.allclose(out_f32, ref, atol=1e-5, rtol=1e-5)

    # Default bf16-streaming path (f32 accumulate): relaxed tolerance.
    out = jax.block_until_ready(downsample2d(x, weight, bias))
    assert out.shape == (B, C_out, H // 2, W // 2)
    assert jnp.allclose(out, ref, atol=5e-2, rtol=5e-2), \
        float(jnp.max(jnp.abs(out - ref)))

    print("KERNEL_OK")
</pallas_src>

<mosaic_0001>
module attributes {stable_mosaic.version = 11 : i64} {
  func.func @_conv1x1_nchw_kernel(%arg0: i32, %arg1: i32, %arg2: memref<1x16x64xf32, #tpu.memory_space<vmem>>, %arg3: memref<8x16xf32, #tpu.memory_space<vmem>>, %arg4: memref<8x1xf32, #tpu.memory_space<vmem>>, %arg5: memref<1x8x64xf32, #tpu.memory_space<vmem>>) attributes {dimension_semantics = [#tpu.dimension_semantics<parallel>, #tpu.dimension_semantics<parallel>], iteration_bounds = array<i64: 2, 1>, scalar_prefetch = 0 : i64, scratch_operands = 0 : i64, tpu.core_type = #tpu.core_type<tc>, window_params = [{transform_indices = @transform_0, window_bounds = array<i64: 1, 16, 64>}, {pipeline_mode = #tpu.pipeline_mode<synchronous>, transform_indices = @transform_1, window_bounds = array<i64: 8, 16>}, {pipeline_mode = #tpu.pipeline_mode<synchronous>, transform_indices = @transform_2, window_bounds = array<i64: 8, 1>}, {transform_indices = @transform_3, window_bounds = array<i64: 1, 8, 64>}]} {
    %c0 = arith.constant 0 : index
    %c0_0 = arith.constant 0 : index
    %0 = vector.load %arg3[%c0, %c0_0] : memref<8x16xf32, #tpu.memory_space<vmem>>, vector<8x16xf32>
    %c0_1 = arith.constant 0 : index
    %c0_2 = arith.constant 0 : index
    %c0_3 = arith.constant 0 : index
    %1 = vector.load %arg2[%c0_1, %c0_2, %c0_3] : memref<1x16x64xf32, #tpu.memory_space<vmem>>, vector<1x16x64xf32>
    %2 = vector.shape_cast %1 : vector<1x16x64xf32> to vector<16x64xf32>
    %cst = arith.constant dense<0.000000e+00> : vector<8x64xf32>
    %3 = tpu.matmul %0, %2, %cst {dimension_numbers = #tpu.dot_dimension_numbers<[1], [0], [0], [1], [0, 0, 1, 1], [], []>} : vector<8x16xf32>, vector<16x64xf32>, vector<8x64xf32> -> vector<8x64xf32>
    %c0_4 = arith.constant 0 : index
    %c0_5 = arith.constant 0 : index
    %4 = vector.load %arg4[%c0_4, %c0_5] : memref<8x1xf32, #tpu.memory_space<vmem>>, vector<8x1xf32>
    %5 = vector.broadcast %4 : vector<8x1xf32> to vector<8x64xf32>
    %6 = arith.addf %3, %5 : vector<8x64xf32>
    %c0_6 = arith.constant 0 : index
    %c0_7 = arith.constant 0 : index
    %c0_8 = arith.constant 0 : index
    %7 = vector.load %arg5[%c0_6, %c0_7, %c0_8] : memref<1x8x64xf32, #tpu.memory_space<vmem>>, vector<1x8x64xf32>
    %8 = vector.shape_cast %7 : vector<1x8x64xf32> to vector<8x64xf32>
    %9 = vector.shape_cast %6 : vector<8x64xf32> to vector<1x8x64xf32>
    tpu.vector_store %arg5[%c0_6, %c0_7, %c0_8], %9 {strides = array<i32>} : memref<1x8x64xf32, #tpu.memory_space<vmem>>, vector<1x8x64xf32>,
    return
  }
  func.func @transform_0(%arg0: i32, %arg1: i32) -> (i32, i32, i32) {
    %c0_i32 = arith.constant 0 : i32
    %c0_i32_0 = arith.constant 0 : i32
    return %arg0, %c0_i32, %arg1 : i32, i32, i32
  }
  func.func @transform_1(%arg0: i32, %arg1: i32) -> (i32, i32) {
    %c0_i32 = arith.constant 0 : i32
    %c0_i32_0 = arith.constant 0 : i32
    %c0_i32_1 = arith.constant 0 : i32
    return %c0_i32, %c0_i32_0 : i32, i32
  }
  func.func @transform_2(%arg0: i32, %arg1: i32) -> (i32, i32) {
    %c0_i32 = arith.constant 0 : i32
    %c0_i32_0 = arith.constant 0 : i32
    %c0_i32_1 = arith.constant 0 : i32
    return %c0_i32, %c0_i32_0 : i32, i32
  }
  func.func @transform_3(%arg0: i32, %arg1: i32) -> (i32, i32, i32) {
    %c0_i32 = arith.constant 0 : i32
    %c0_i32_0 = arith.constant 0 : i32
    return %arg0, %c0_i32, %arg1 : i32, i32, i32
  }
}

</mosaic_0001>

<bundles_post_ra>
// kernel: tpu_custom_call.1
= control target key start
LH: loop header
LB: loop body
LE: loop exit
PB: predicated region body
PF: predicated region fallthrough
CT: control target
= control target key end

     0   :  { %8 = vsyncpa [#allocation3], 0  ;;  %s1005_s0 = inlined_call_operand.hbm [shape: f32[2,16,64], index: 0, kind: input, shape index: {}]   ;;  %s1006_s1 = inlined_call_operand.hbm [shape: f32[8,16], index: 1, kind: input, shape index: {}]   ;;  %s1007_s2 = inlined_call_operand.hbm [shape: f32[8,1], index: 2, kind: input, shape index: {}]   ;;  %s1008_s3 = inlined_call_operand.hbm [shape: f32[2,8,64], index: 3, kind: output, shape index: {}]  }
   0x1   :  { %10 = vsyncpa [#allocation3 + $0x1], 0 }
   0x2   :  { %11 = vsyncpa [#allocation6], 0 }
   0x3   :  { %12 = vsyncpa [#allocation4], 0 }
   0x4   :  { %14 = vsyncpa [#allocation4 + $0x1], 0  ;;  %s758_s12 = smov 0   ;;  %s760_s13 = smov 0  }
   0x5   :  { %s762_s14 = smov 0   ;;  %s764_s15 = smov 0  }
   0x6   :  { %s766_s16 = smov 0   ;;  %s768_s17 = smov 0  }
   0x7 LB: > { %s431_s18 = sadd.s32 4294967295, %s726_s17   ;;  %s432_s19 = sadd.s32 4294967294, %s726_s17   ;;  %s726_s17 = sphi %s768_s17, %s20_s17   ;;  %s722_s16 = sphi %s766_s16, %s1034_s16   ;;  %s718_s15 = sphi %s764_s15, %s1033_s15   ;;  %s714_s14 = sphi %s762_s14, %s1032_s14   ;;  %s710_s13 = sphi %s760_s13, %s1031_s13   ;;  %s706_s12 = sphi %s758_s12, %s1030_s12  }
   0x8   : > { %s41_s20 = sadd.s32 1, %s714_s14  ;;  %p48_p0 = scmp.ne.s32.totalorder %s714_s14, %s710_s13 }
   0x9   : > { %p49_p1 = scmp.eq.s32.totalorder %s726_s17, 0  ;;  %p54_p2 = scmp.ne.s32.totalorder %s710_s13, %s706_s12 }
   0xa   : > { %p796_p3 = scmp.eq.s32.totalorder %s431_s18, 0  ;;  %p122_p4 = scmp.eq.s32.totalorder %s431_s18, 1 }
   0xb   : > { %p800_p5 = por %p49_p1, %p48_p0  ;;  %p128_p6 = scmp.eq.s32.totalorder %s432_s19, 1 }
   0xc   : > { %s1015_s21 = scalar_select %p796_p3, 1, 0 }
   0xd   : > { %p806_p7 = por %p796_p3, %p54_p2  ;;  %p810_p8 = por %p122_p4, %p48_p0 }
   0xe   : > { %p814_p9 = por %p128_p6, %p54_p2  ;;  %p433_p10 = scmp.ge.s32.totalorder %s726_s17, 1 }
   0xf   : > { %s1017_s23 = scalar_select %p806_p7, 1, 0 }
  0x10   : > { %s1018_s24 = scalar_select %p810_p8, 1, 0 }
  0x11   : > { %s1019_s25 = scalar_select %p814_p9, 1, 0 }
  0x12   : > { %p135_p11 = scmp.lt.s32.totalorder %s726_s17, 3  ;;  %s728_s27 = smov [#allocation5]  }
  0x13   : > { %s148_s28 = sshll.u32 %s728_s27, 4  ;;  %p493_p1 = scmp.lt.s32.totalorder %s726_s17, 2  ;;  %s149_s28 = int_to_ptr.vmem [resolvable:$true] %s148_s28 }
  0x14   : > { %p821_p13 = pnand %p433_p10, %p135_p11  ;;  %s729_s30 = smov [#allocation7]  }
  0x15   : > { %p830_p4 = pnand %p493_p1, %p800_p5  ;;  %s159_s4 = sshll.u32 %s729_s30, 4  ;;  %s840_s4 = int_to_ptr.vmem [resolvable:$true] %s159_s4 }
  0x16   : > { %s1020_s26 = scalar_select %p821_p13, 1, 0 }
  0x17   : > { %p476_p0 = pneg %p821_p13  ;;  %s554_s8 = scalar_lea.hbm %s1006_s1, 128 }
  0x18   : > { %s1021_s29 = scalar_select %p830_p4, 1, 0 }
  0x19   : > { %p836_p2 = pnand %p476_p0, %p796_p3  ;;  %p555_p5 = scmp.ne.s32.totalorder %s1006_s1, %s554_s8 }
  0x1a   : > { %p561_p1 = scmp.lt.u32.totalorder %s554_s8, %s1006_s1 }
  0x1b   : > { %p556_p6 = pneg %p836_p2 }
  0x1d   : > { %p557_p10 = pnand %p556_p6, %p555_p5 }
  0x1f   : > { %p558_p11 = pneg %p557_p10 }
  0x21   : > { %p563_p0 = pnand %p561_p1, %p558_p11 }
  0x23   : > { %566 = shalt.err (!%p563_p0)
}
  0x24   : > { %s567_s19 = scalar_lea.vmem %s149_s28, 128  ;;  %p575_p3 = scmp.lt.s32.totalorder %s149_s28, %s149_s28 }
  0x25   : > { %p568_p12 = scmp.ne.s32.totalorder %s149_s28, %s567_s19  ;;  %p576_p7 = scmp.lt.s32.totalorder %s567_s19, %s567_s19 }
  0x27   : > { %p570_p9 = pnand %p568_p12, %p556_p6  ;;  %p577_p13 = por %p576_p7, %p575_p3 }
  0x29   : > { %p571_p8 = pneg %p570_p9 }
  0x2b   : > { %p578_p4 = pnand %p577_p13, %p571_p8 }
  0x2d   : > { %581 = shalt.err (!%p578_p4)
}
  0x2e   : > { %479 = dma.hbm_to_vmem [thread:$0]  (!%p836_p2), %s1006_s1, 128, %s149_s28, [#allocation6]  }
  0x2f   : > { %s582_s7 = scalar_lea.hbm %s1007_s2, 128 }
  0x30   : > { %p583_p9 = scmp.ne.s32.totalorder %s1007_s2, %s582_s7  ;;  %p589_p8 = scmp.lt.u32.totalorder %s582_s7, %s1007_s2 }
  0x32   : > { %p585_p3 = pnand %p583_p9, %p556_p6 }
  0x34   : > { %p586_p7 = pneg %p585_p3 }
  0x36   : > { %p591_p12 = pnand %p589_p8, %p586_p7 }
  0x38   : > { %594 = shalt.err (!%p591_p12)
}
  0x39   : > { %s595_s28 = scalar_lea.vmem %s840_s4, 128  ;;  %p603_p10 = scmp.lt.s32.totalorder %s840_s4, %s840_s4 }
  0x3a   : > { %p596_p13 = scmp.ne.s32.totalorder %s840_s4, %s595_s28  ;;  %p604_p11 = scmp.lt.s32.totalorder %s595_s28, %s595_s28 }
  0x3c   : > { %p598_p4 = pnand %p596_p13, %p556_p6  ;;  %p605_p1 = por %p604_p11, %p603_p10 }
  0x3e   : > { %p599_p5 = pneg %p598_p4 }
  0x40   : > { %p606_p0 = pnand %p605_p1, %p599_p5 }
  0x42   : > { %609 = shalt.err (!%p606_p0)
}
  0x43   : > { %482 = dma.hbm_to_vmem [thread:$0]  (!%p836_p2), %s1007_s2, 128, %s840_s4, [#allocation6]  }
  0x44   : > { %s32_s22 = sadd.s32 1, %s722_s16  ;;  %s170_s27 = sand.u32 1, %s714_s14  }
  0x45   : > { %p34_p6 = scmp.ge.s32.totalorder %s32_s22, 2  ;;  %s437_s30 = sshll.u32 %s170_s27, 4 }
  0x46   : > { %s450_s6 = sshll.u32 %s722_s16, 8  ;;  %s174_s4 = scalar_lea.vmem [#allocation2], %s437_s30 }
  0x47   : > { %s1036_s22 = smov (%p34_p6, %s32_s22), 0  ;;  %s897_s8 = scalar_lea.hbm %s1005_s0, %s450_s6 }
  0x48   : > { %s36_s9 = ssub.s32 %s722_s16, %s1036_s22  ;;  %s182_s10 = sshll.u32 %s174_s4, 4  ;;  %s901_s10 = int_to_ptr.vmem [resolvable:$true] %s182_s10 }
  0x49   : > { %p39_p2 = scmp.eq.s32.totalorder %s36_s9, 0  ;;  %s908_s28 = scalar_lea.sflag [#allocation3], %s170_s27 }
  0x4a   : > { %s610_s18 = scalar_lea.hbm %s897_s8, 256  ;;  %p1023_p3 = scmp.ne.s32.totalorder %s1021_s29, 0 }
  0x4b   : > { %s906_s11 = scalar_select %p39_p2, %s714_s14, %s41_s20  }
  0x4c   : > { %p611_p9 = scmp.ne.s32.totalorder %s897_s8, %s610_s18  ;;  %p612_p7 = pneg %p1023_p3 }
  0x4d   : > { %s615_s30 = scalar_lea.hbm %s1005_s0, 512  ;;  %p616_p13 = scmp.lt.u32.totalorder %s897_s8, %s1005_s0 }
  0x4e   : > { %p613_p8 = pnand %p612_p7, %p611_p9  ;;  %p617_p4 = scmp.lt.u32.totalorder %s615_s30, %s610_s18 }
  0x4f   : > { %p619_p10 = scmp.lt.u32.totalorder %s610_s18, %s897_s8 }
  0x50   : > { %p614_p12 = pneg %p613_p8  ;;  %p618_p5 = por %p617_p4, %p616_p13 }
  0x52   : > { %p620_p11 = por %p619_p10, %p618_p5 }
  0x54   : > { %p621_p1 = pnand %p620_p11, %p614_p12 }
  0x56   : > { %624 = shalt.err (!%p621_p1)
}
  0x57   : > { %s625_s20 = scalar_lea.vmem %s901_s10, 256  ;;  %s730_s27 = smov [#allocation2]  }
  0x58   : > { %p626_p0 = scmp.ne.s32.totalorder %s901_s10, %s625_s20  ;;  %s630_s9 = sshll.u32 %s730_s27, 4  ;;  %s631_s9 = int_to_ptr.vmem [resolvable:$false] %s630_s9 }
  0x59   : > { %s632_s4 = scalar_lea.vmem %s631_s9, 512  ;;  %p633_p9 = scmp.lt.s32.totalorder %s901_s10, %s631_s9 }
  0x5a   : > { %p628_p6 = pnand %p626_p0, %p612_p7  ;;  %p634_p8 = scmp.lt.s32.totalorder %s632_s4, %s625_s20 }
  0x5c   : > { %p629_p2 = pneg %p628_p6  ;;  %p635_p13 = por %p634_p8, %p633_p9 }
  0x5e   : > { %p636_p4 = pnand %p635_p13, %p629_p2 }
  0x60   : > { %639 = shalt.err (!%p636_p4)
}
  0x61   : > { %s731_s18 = smov 128   ;;  %s732_s19 = smov 8  }
  0x62   : > { %486 = dma.hbm_to_vmem [thread:$0]  (!%p1023_p3), %s897_s8, 256, %s901_s10, %s908_s28, %s731_s18, %s731_s18, %s732_s19  }
  0x63   : > { %p1024_p7 = scmp.ne.s32.totalorder %s1020_s26, 0 }
  0x64   : > { %s939_s6 = sand.u32 (!%p1024_p7), 1, %s710_s13   ;;  %p1025_p12 = scmp.ne.s32.totalorder (!%p1024_p7), %s1017_s23, 0 }
  0x65   : > { %194 = sbr.rel (%p1024_p7) target bundleno = 347 (0x15b), region = 32  ;;  %s441_s30 = sshll.u32 (!%p1024_p7), %s939_s6, 4 }
  0x66   : > { %s197_s5 = scalar_lea.sflag (!%p1024_p7), [#allocation3], %s939_s6  ;;  %s200_s7 = scalar_lea.vmem (!%p1024_p7), [#allocation2], %s441_s30 }
  0x6c   : > { %693 = dma.done.wait (%p1025_p12), %s197_s5, 256  }
  0x6d   : > { %695 = vsyncadd (%p1025_p12), %s197_s5, 4294967040  ;;  %p1026_p5 = scmp.ne.s32.totalorder %s1015_s21, 0 }
  0x6f   : > { %697 = dma.done.wait (%p1026_p5), [#allocation6], 256  }
  0x70   : > { %699 = vsyncadd (%p1026_p5), [#allocation6], 4294967040  ;;  %v733_v0 = vmov 0.0|0.0   ;;  %vm734_vm0 = vmmov 0   ;;  %v735_v1 = vmov 0.0   ;;  %v736_v2 = vmov 0  }
  0x71   : > { %461 = vmatprep.subr.bf16.mxu0 %v733_v0  ;;  %458 = vmatprep.mubr.msk.f32.mxu0 %vm734_vm0, %v735_v1  ;;  %v232_v3 = vld [vmem:[%s200_s7] sm:$0xff]  ;;  %v233_v4 = vld [vmem:[%s200_s7 + $0x8] sm:$0xff]  ;;  %vm240_vm1 = vcmask 130048   ;;  %s444_s21 = sshll.u32 %s939_s6, 3  ;;  %s447_s23 = sshll.u32 %s718_s15, 7  ;;  %vm314_vm2 = vcmask 523264  }
  0x72   : > { %553 = vset.pattern.permute.xlu0 %v736_v2  ;;  %v462_v5 = vpack.c.bf16 %v233_v4, %v232_v3  ;;  %v234_v6 = vld [vmem:[#allocation7] sm:$0xff]  ;;  %v231_v7 = vld [vmem:[#allocation5] sm:$0xff]  ;;  %s230_s26 = scalar_lea.vmem [#allocation8], %s444_s21  ;;  %s956_s28 = scalar_lea.hbm %s1008_s3, %s447_s23 }
  0x73   : > { %237 = vperm.xlu0 %553, %v234_v6   ;;  %s331_s29 = sshll.u32 %s230_s26, 4  ;;  %s317_s20 = scalar_lea.sflag [#allocation4], %s939_s6  ;;  %s958_s29 = int_to_ptr.vmem [resolvable:$true] %s331_s29 }
  0x74   : > { %463 = vmatpush3.bf16.msra.mxu0 %v462_v5  ;;  %s640_s27 = scalar_lea.vmem %s958_s29, 128  ;;  %p1027_p10 = scmp.ne.s32.totalorder %s1018_s24, 0 }
  0x75   : > { %p641_p3 = scmp.ne.s32.totalorder %s958_s29, %s640_s27  ;;  %s737_s15 = smov [#allocation8]  }
  0x76   : > { %s644_s9 = sshll.u32 %s737_s15, 4  ;;  %s645_s9 = int_to_ptr.vmem [resolvable:$false] %s644_s9 }
  0x77   : > { %459 = vmatmul.mubr.msk.f32.vlgmr.msra.gmra.mrb[0].mxu0 %vm240_vm1, %v231_v7  ;;  %p642_p11 = pnand %p641_p3, %p1027_p10  ;;  %s646_s4 = scalar_lea.vmem %s645_s9, 256 }
  0x78   : > { %p647_p0 = scmp.lt.s32.totalorder %s958_s29, %s645_s9  ;;  %p648_p6 = scmp.lt.s32.totalorder %s646_s4, %s640_s27 }
  0x79   : > { %p643_p1 = pneg %p642_p11 }
  0x7a   : > { %p649_p2 = por %p648_p6, %p647_p0 }
  0x7c   : > { %p650_p9 = pnand %p649_p2, %p643_p1 }
  0xf2   : > { %v238_v8 = vpop.permute.xlu0 %237 }
 0x14a   : > { %v310_v9 = vpop.f32.mrb[0].mxu0 }
 0x14b   : > { %v311_v10 = vadd.f32 %v310_v9, %v238_v8  ;;  %v460_v11 = vpop.f32.mrb[1].mxu0 }
 0x14d   : > { %315 = vst.msk [vmem:[%s230_s26] sm:$0xff] %vm314_vm2, %v311_v10 }
 0x14e   : > { %653 = shalt.err (!%p650_p9)
}
 0x14f   : > { %s654_s18 = scalar_lea.hbm %s956_s28, 128  ;;  %s658_s30 = scalar_lea.hbm %s1008_s3, 256 }
 0x150   : > { %p655_p8 = scmp.ne.s32.totalorder %s956_s28, %s654_s18  ;;  %p659_p7 = scmp.lt.u32.totalorder %s956_s28, %s1008_s3 }
 0x151   : > { %p660_p12 = scmp.lt.u32.totalorder %s658_s30, %s654_s18  ;;  %p662_p3 = scmp.lt.u32.totalorder %s654_s18, %s956_s28 }
 0x152   : > { %p656_p13 = pnand %p655_p8, %p1027_p10 }
 0x153   : > { %p661_p5 = por %p660_p12, %p659_p7 }
 0x154   : > { %p657_p4 = pneg %p656_p13 }
 0x155   : > { %p663_p11 = por %p662_p3, %p661_p5 }
 0x157   : > { %p664_p1 = pnand %p663_p11, %p657_p4 }
 0x159   : > { %667 = shalt.err (!%p664_p1)
}
 0x15a   : > { %474 = dma.vmem_to_hbm [thread:$0]  (%p1027_p10), %s958_s29, 128, %s956_s28, %s317_s20  }
 0x15b PF: > { %s343_s21 = sand.u32 1, %s706_s12   ;;  %p1028_p0 = scmp.ne.s32.totalorder %s1019_s25, 0 }
 0x15c   : > { %p1029_p6 = scmp.ge.s32.totalorder %s726_s17, 2  ;;  %s344_s23 = scalar_lea.sflag [#allocation4], %s343_s21 }
 0x15e   : > { %p488_p2 = pnand %p1029_p6, %p1028_p0 }
 0x160   : > { %701 = dma.done.wait (!%p488_p2), %s344_s23, 128  }
 0x161   : > { %703 = vsyncadd (!%p488_p2), %s344_s23, 4294967168  ;;  %s20_s17 = sadd.s32 1, %s726_s17   ;;  %s1030_s12 = smov %s710_s13 }
 0x162   : > { %p17_p9 = scmp.ge.s32.totalorder %s20_s17, 4   ;;  %s1031_s13 = smov %s714_s14 }
 0x163   : > { %s1032_s14 = smov %s906_s11  ;;  %s1033_s15 = smov %s722_s16 }
 0x164   : > { %s1034_s16 = smov %s1036_s22  ;;  %19 = sbr.rel (!%p17_p9) target bundleno = 7 (0x7), region = 85 }
 0x16b   :  { %349 = vsyncpa [#allocation3], 1 }
 0x16c   :  { %351 = vsyncpa [#allocation3 + $0x1], 1 }
 0x16d   :  { %352 = vsyncpa [#allocation6], 1 }
 0x16e   :  { %353 = vsyncpa [#allocation4], 1 }
 0x16f   :  { %355 = vsyncpa [#allocation4 + $0x1], 1 }

</bundles_post_ra>
